<compile_context>
chip_gen: v5e
topology: v5e:2x2
jax: 0.10.0
libtpu: 0.0.40
codegen_flags: <defaults>
</compile_context>

<pallas_src>
import functools
import numpy as np
import jax
import jax.numpy as jnp
from jax.experimental import pallas as pl
from jax.experimental.pallas import tpu as pltpu


def _patchmix_group_kernel(mix_num, group_size, S, x_ref, out_ref):
    # out[g, k*S:(k+1)*S, :] = x[(g + k) % group_size, k*S:(k+1)*S, :]
    # Unrolled as static slice copies; the wrap-around is two copies per k.
    for k in range(mix_num):
        lo = k * S
        hi = lo + S
        if k == 0:
            out_ref[:, lo:hi, :] = x_ref[:, lo:hi, :]
        else:
            out_ref[: group_size - k, lo:hi, :] = x_ref[k:, lo:hi, :]
            out_ref[group_size - k:, lo:hi, :] = x_ref[:k, lo:hi, :]


def patch_mix(patches, mix_num=4, group_size=8):
    B, T, C = patches.shape
    assert mix_num <= group_size
    assert T % mix_num == 0 and B % group_size == 0
    N = B // group_size
    S = T // mix_num

    # ---- target: statically known, hoisted entirely out of the kernel ----
    # TODO(synk): PyTorch uses torch.long (int64); int32 used here (TPU-native).
    i = np.arange(B)[:, None]
    k = np.arange(mix_num)[None, :]
    target = jnp.asarray(
        (i // group_size) * group_size + ((i % group_size) + k) % group_size,
        dtype=jnp.int32)

    # ---- permuted patches: one group per grid step ----
    block = (group_size, T, C)
    block_bytes = group_size * T * C * patches.dtype.itemsize
    compiler_kwargs = dict(dimension_semantics=("parallel",))
    # double-buffered input + output blocks; raise scoped VMEM only if needed
    vmem_needed = 4 * block_bytes
    if vmem_needed > (32 << 20):
        compiler_kwargs["vmem_limit_bytes"] = int(min(vmem_needed * 5 // 4,
                                                      112 << 20))

    kernel = functools.partial(_patchmix_group_kernel, mix_num, group_size, S)
    mixed = pl.pallas_call(
        kernel,
        grid=(N,),
        in_specs=[pl.BlockSpec(block, lambda n: (n, 0, 0))],
        out_specs=pl.BlockSpec(block, lambda n: (n, 0, 0)),
        out_shape=jax.ShapeDtypeStruct((B, T, C), patches.dtype),
        compiler_params=pltpu.CompilerParams(**compiler_kwargs),
    )(patches)
    return mixed, target


def patch_mix_ref(x, mix_num, group_size):
    """Pure numpy reference mirroring the PyTorch forward."""
    B, T, C = x.shape
    N = B // group_size
    S = T // mix_num
    L = group_size * mix_num
    p = x.reshape(N, group_size, mix_num, S, C).reshape(N, L, S, C)
    idx = (np.arange(L) + (np.arange(L) % mix_num) * mix_num) % L
    p = p[:, idx]
    p = p.reshape(N, group_size, mix_num, S, C).reshape(B, T, C)
    i = np.arange(B)[:, None]
    k = np.arange(mix_num)[None, :]
    tgt = (i // group_size) * group_size + ((i % group_size) + k) % group_size
    return p, tgt.astype(np.int32)


if __name__ == "__main__":
    # PatchMix has no learned parameters; only hyperparameters mix_num / group_size.
    mix_num, group_size = 4, 8
    B, T, C = 16, 32, 128        # B % group_size == 0, T % mix_num == 0, C lane-dense
    key = jax.random.PRNGKey(0)
    patches = jax.random.normal(key, (B, T, C), dtype=jnp.float32)

    out, target = patch_mix(patches, mix_num=mix_num, group_size=group_size)
    jax.block_until_ready(out)
    jax.block_until_ready(target)

    ref_out, ref_tgt = patch_mix_ref(np.asarray(patches), mix_num, group_size)
    np.testing.assert_allclose(np.asarray(out), ref_out, rtol=0, atol=0)
    np.testing.assert_array_equal(np.asarray(target), ref_tgt)

    print("KERNEL_OK")
</pallas_src>

<mosaic_0001>
module attributes {stable_mosaic.version = 11 : i64} {
  func.func @_patchmix_group_kernel(%arg0: i32, %arg1: memref<8x32x128xf32, #tpu.memory_space<vmem>>, %arg2: memref<8x32x128xf32, #tpu.memory_space<vmem>>) attributes {dimension_semantics = [#tpu.dimension_semantics<parallel>], iteration_bounds = array<i64: 2>, scalar_prefetch = 0 : i64, scratch_operands = 0 : i64, tpu.core_type = #tpu.core_type<tc>, window_params = [{transform_indices = @transform_0, window_bounds = array<i64: 8, 32, 128>}, {transform_indices = @transform_1, window_bounds = array<i64: 8, 32, 128>}]} {
    %c0 = arith.constant 0 : index
    %c0_0 = arith.constant 0 : index
    %c0_1 = arith.constant 0 : index
    %0 = vector.load %arg1[%c0, %c0_0, %c0_1] : memref<8x32x128xf32, #tpu.memory_space<vmem>>, vector<8x8x128xf32>
    %c0_2 = arith.constant 0 : index
    %c0_3 = arith.constant 0 : index
    %c0_4 = arith.constant 0 : index
    %1 = vector.load %arg2[%c0_2, %c0_3, %c0_4] : memref<8x32x128xf32, #tpu.memory_space<vmem>>, vector<8x8x128xf32>
    tpu.vector_store %arg2[%c0_2, %c0_3, %c0_4], %0 {strides = array<i32>} : memref<8x32x128xf32, #tpu.memory_space<vmem>>, vector<8x8x128xf32>,
    %c1 = arith.constant 1 : index
    %c8 = arith.constant 8 : index
    %c0_5 = arith.constant 0 : index
    %2 = vector.load %arg1[%c1, %c8, %c0_5] : memref<8x32x128xf32, #tpu.memory_space<vmem>>, vector<7x8x128xf32>
    %c0_6 = arith.constant 0 : index
    %c8_7 = arith.constant 8 : index
    %c0_8 = arith.constant 0 : index
    %3 = vector.load %arg2[%c0_6, %c8_7, %c0_8] : memref<8x32x128xf32, #tpu.memory_space<vmem>>, vector<7x8x128xf32>
    tpu.vector_store %arg2[%c0_6, %c8_7, %c0_8], %2 {strides = array<i32>} : memref<8x32x128xf32, #tpu.memory_space<vmem>>, vector<7x8x128xf32>,
    %c0_9 = arith.constant 0 : index
    %c8_10 = arith.constant 8 : index
    %c0_11 = arith.constant 0 : index
    %4 = vector.load %arg1[%c0_9, %c8_10, %c0_11] : memref<8x32x128xf32, #tpu.memory_space<vmem>>, vector<1x8x128xf32>
    %c7 = arith.constant 7 : index
    %c8_12 = arith.constant 8 : index
    %c0_13 = arith.constant 0 : index
    %5 = vector.load %arg2[%c7, %c8_12, %c0_13] : memref<8x32x128xf32, #tpu.memory_space<vmem>>, vector<1x8x128xf32>
    tpu.vector_store %arg2[%c7, %c8_12, %c0_13], %4 {strides = array<i32>} : memref<8x32x128xf32, #tpu.memory_space<vmem>>, vector<1x8x128xf32>,
    %c2 = arith.constant 2 : index
    %c16 = arith.constant 16 : index
    %c0_14 = arith.constant 0 : index
    %6 = vector.load %arg1[%c2, %c16, %c0_14] : memref<8x32x128xf32, #tpu.memory_space<vmem>>, vector<6x8x128xf32>
    %c0_15 = arith.constant 0 : index
    %c16_16 = arith.constant 16 : index
    %c0_17 = arith.constant 0 : index
    %7 = vector.load %arg2[%c0_15, %c16_16, %c0_17] : memref<8x32x128xf32, #tpu.memory_space<vmem>>, vector<6x8x128xf32>
    tpu.vector_store %arg2[%c0_15, %c16_16, %c0_17], %6 {strides = array<i32>} : memref<8x32x128xf32, #tpu.memory_space<vmem>>, vector<6x8x128xf32>,
    %c0_18 = arith.constant 0 : index
    %c16_19 = arith.constant 16 : index
    %c0_20 = arith.constant 0 : index
    %8 = vector.load %arg1[%c0_18, %c16_19, %c0_20] : memref<8x32x128xf32, #tpu.memory_space<vmem>>, vector<2x8x128xf32>
    %c6 = arith.constant 6 : index
    %c16_21 = arith.constant 16 : index
    %c0_22 = arith.constant 0 : index
    %9 = vector.load %arg2[%c6, %c16_21, %c0_22] : memref<8x32x128xf32, #tpu.memory_space<vmem>>, vector<2x8x128xf32>
    tpu.vector_store %arg2[%c6, %c16_21, %c0_22], %8 {strides = array<i32>} : memref<8x32x128xf32, #tpu.memory_space<vmem>>, vector<2x8x128xf32>,
    %c3 = arith.constant 3 : index
    %c24 = arith.constant 24 : index
    %c0_23 = arith.constant 0 : index
    %10 = vector.load %arg1[%c3, %c24, %c0_23] : memref<8x32x128xf32, #tpu.memory_space<vmem>>, vector<5x8x128xf32>
    %c0_24 = arith.constant 0 : index
    %c24_25 = arith.constant 24 : index
    %c0_26 = arith.constant 0 : index
    %11 = vector.load %arg2[%c0_24, %c24_25, %c0_26] : memref<8x32x128xf32, #tpu.memory_space<vmem>>, vector<5x8x128xf32>
    tpu.vector_store %arg2[%c0_24, %c24_25, %c0_26], %10 {strides = array<i32>} : memref<8x32x128xf32, #tpu.memory_space<vmem>>, vector<5x8x128xf32>,
    %c0_27 = arith.constant 0 : index
    %c24_28 = arith.constant 24 : index
    %c0_29 = arith.constant 0 : index
    %12 = vector.load %arg1[%c0_27, %c24_28, %c0_29] : memref<8x32x128xf32, #tpu.memory_space<vmem>>, vector<3x8x128xf32>
    %c5 = arith.constant 5 : index
    %c24_30 = arith.constant 24 : index
    %c0_31 = arith.constant 0 : index
    %13 = vector.load %arg2[%c5, %c24_30, %c0_31] : memref<8x32x128xf32, #tpu.memory_space<vmem>>, vector<3x8x128xf32>
    tpu.vector_store %arg2[%c5, %c24_30, %c0_31], %12 {strides = array<i32>} : memref<8x32x128xf32, #tpu.memory_space<vmem>>, vector<3x8x128xf32>,
    return
  }
  func.func @transform_0(%arg0: i32) -> (i32, i32, i32) {
    %c0_i32 = arith.constant 0 : i32
    %c0_i32_0 = arith.constant 0 : i32
    %c0_i32_1 = arith.constant 0 : i32
    return %arg0, %c0_i32, %c0_i32_0 : i32, i32, i32
  }
  func.func @transform_1(%arg0: i32) -> (i32, i32, i32) {
    %c0_i32 = arith.constant 0 : i32
    %c0_i32_0 = arith.constant 0 : i32
    %c0_i32_1 = arith.constant 0 : i32
    return %arg0, %c0_i32, %c0_i32_0 : i32, i32, i32
  }
}

</mosaic_0001>

<bundles_post_ra>
// kernel: tpu_custom_call.1
= control target key start
LH: loop header
LB: loop body
LE: loop exit
PB: predicated region body
PF: predicated region fallthrough
CT: control target
= control target key end

     0   :  { %6 = vsyncpa [#allocation3], 0  ;;  %s702_s0 = inlined_call_operand.hbm [shape: f32[16,32,128], index: 0, kind: input, shape index: {}]   ;;  %s703_s1 = inlined_call_operand.hbm [shape: f32[16,32,128], index: 1, kind: output, shape index: {}]  }
   0x1   :  { %8 = vsyncpa [#allocation3 + $0x1], 0 }
   0x2   :  { %9 = vsyncpa [#allocation4], 0 }
   0x3   :  { %11 = vsyncpa [#allocation4 + $0x1], 0  ;;  %s506_s6 = smov 0   ;;  %s508_s7 = smov 0  }
   0x4   :  { %s510_s8 = smov 0   ;;  %s512_s9 = smov 0  }
   0x5 LB: > { %s527_s10 = sadd.s32 4294967295, %s490_s9   ;;  %s300_s11 = sadd.s32 4294967294, %s490_s9   ;;  %s490_s9 = sphi %s512_s9, %s713_s9   ;;  %s486_s8 = sphi %s510_s8, %s712_s8   ;;  %s482_s7 = sphi %s508_s7, %s711_s7   ;;  %s478_s6 = sphi %s506_s6, %s710_s6  }
   0x6   : > { %s531_s12 = sadd.s32 1, %s490_s9   ;;  %s24_s13 = sadd.s32 1, %s486_s8 }
   0x7   : > { %s21_s14 = ssub.s32 %s490_s9, %s531_s12  ;;  %p31_p0 = scmp.ne.s32.totalorder %s486_s8, %s482_s7 }
   0x8   : > { %p22_p1 = scmp.eq.s32.totalorder %s21_s14, 0  ;;  %p32_p2 = scmp.eq.s32.totalorder %s490_s9, 0 }
   0x9   : > { %p37_p3 = scmp.ne.s32.totalorder %s482_s7, %s478_s6  ;;  %p38_p4 = scmp.eq.s32.totalorder %s527_s10, 0 }
   0xa   : > { %s543_s15 = scalar_select %p22_p1, %s486_s8, %s24_s13  }
   0xb   : > { %p545_p5 = por %p32_p2, %p31_p0  ;;  %p549_p6 = por %p38_p4, %p37_p3 }
   0xc   : > { %p61_p7 = scmp.eq.s32.totalorder %s527_s10, 1  ;;  %p67_p8 = scmp.eq.s32.totalorder %s300_s11, 1 }
   0xd   : > { %p356_p10 = scmp.lt.s32.totalorder %s490_s9, 2  ;;  %s87_s20 = sand.u32 1, %s486_s8  }
   0xe   : > { %p556_p11 = por %p61_p7, %p31_p0  ;;  %p560_p12 = por %p67_p8, %p37_p3 }
   0xf   : > { %s341_s21 = sshll.u32 %s490_s9, 8  ;;  %s303_s22 = sshll.u32 %s87_s20, 8 }
  0x10   : > { %s97_s25 = scalar_lea.hbm %s702_s0, %s341_s21  ;;  %s91_s27 = scalar_lea.vmem [#allocation2], %s303_s22 }
  0x11   : > { %s98_s26 = sshll.u32 %s97_s25, 4  ;;  %s100_s28 = sshll.u32 %s91_s27, 4  ;;  %s99_s26 = int_to_ptr.hbm [resolvable:$true] %s98_s26  ;;  %s101_s28 = int_to_ptr.vmem [resolvable:$true] %s100_s28 }
  0x12   : > { %p571_p13 = pnand %p356_p10, %p545_p5  ;;  %p307_p0 = scmp.ge.s32.totalorder %s490_s9, 1 }
  0x13   : > { %p108_p1 = scmp.lt.s32.totalorder %s490_s9, 3  ;;  %s88_s30 = scalar_lea.sflag [#allocation3], %s87_s20 }
  0x14   : > { %s394_s2 = sshra.s32 %s99_s26, 4  ;;  %p398_p3 = pneg %p571_p13  ;;  %s395_s2 = int_to_ptr.hbm [resolvable:$true] %s394_s2 }
  0x15   : > { %s396_s3 = scalar_lea.hbm %s395_s2, 256  ;;  %s401_s11 = scalar_lea.hbm %s702_s0, 512 }
  0x16   : > { %p397_p2 = scmp.ne.s32.totalorder %s395_s2, %s396_s3  ;;  %p402_p5 = scmp.lt.s32.totalorder %s395_s2, %s702_s0 }
  0x17   : > { %p403_p8 = scmp.lt.s32.totalorder %s401_s11, %s396_s3 }
  0x18   : > { %p399_p4 = pnand %p398_p3, %p397_p2 }
  0x19   : > { %p404_p10 = por %p403_p8, %p402_p5 }
  0x1a   : > { %p400_p7 = pneg %p399_p4 }
  0x1c   : > { %p405_p9 = pnand %p404_p10, %p400_p7 }
  0x1e   : > { %408 = shalt.err (!%p405_p9)
}
  0x1f   : > { %s492_s16 = smov 128   ;;  %s493_s20 = smov 8  }
  0x20   : > { %351 = dma.hbm_to_vmem [thread:$0]  (!%p571_p13), %s99_s26, 4096, %s101_s28, %s88_s30, %s492_s16, %s492_s16, %s493_s20  }
  0x21   : > { %p109_p2 = pnand %p307_p0, %p108_p1 }
  0x22   : > { %s592_s21 = sand.u32 (!%p109_p2), 1, %s482_s7  }
  0x23   : > { %112 = sbr.rel (%p109_p2) target bundleno = 77 (0x4d), region = 24  ;;  %s308_s22 = sshll.u32 (!%p109_p2), %s592_s21, 8 }
  0x24   : > { %s115_s23 = scalar_lea.sflag (!%p109_p2), [#allocation3], %s592_s21  ;;  %s596_s24 = scalar_lea.vmem (!%p109_p2), [#allocation2], %s308_s22 }
  0x28   : > { %469 = dma.done.wait (%p549_p6), %s115_s23, 4096  }
  0x29   : > { %471 = vsyncadd (%p549_p6), %s115_s23, 4294963200  ;;  %v140_v0 = vld [vmem:[%s596_s24] sm:$0xff]  ;;  %s605_s25 = scalar_lea.vmem [#allocation5], %s308_s22  ;;  %v310_v8 = vld [vmem:[%s596_s24 + $0x28] sm:$0xff]  ;;  %s343_s17 = sshll.u32 %s527_s10, 8 }
  0x2a   : > { %v141_v1 = vld [vmem:[%s596_s24 + $0x20] sm:$0xff]  ;;  %148 = vst [vmem:[%s605_s25] sm:$0xff] %v140_v0  ;;  %v311_v9 = vld [vmem:[%s596_s24 + $0x48] sm:$0xff]  ;;  %v318_v16 = vld [vmem:[%s596_s24 + $0x50] sm:$0xff]  ;;  %s223_s28 = scalar_lea.hbm %s703_s1, %s343_s17  ;;  %s224_s10 = sshll.u32 %s605_s25, 4  ;;  %s225_s10 = int_to_ptr.vmem [resolvable:$true] %s224_s10 }
  0x2b   : > { %v142_v2 = vld [vmem:[%s596_s24 + $0x40] sm:$0xff]  ;;  %149 = vst [vmem:[%s605_s25 + $0x20] sm:$0xff] %v141_v1  ;;  %v312_v10 = vld [vmem:[%s596_s24 + $0x68] sm:$0xff]  ;;  %v319_v17 = vld [vmem:[%s596_s24 + $0x70] sm:$0xff]  ;;  %s226_s29 = sshll.u32 %s223_s28, 4  ;;  %s211_s30 = scalar_lea.sflag [#allocation4], %s592_s21  ;;  %s227_s29 = int_to_ptr.hbm [resolvable:$true] %s226_s29 }
  0x2c   : > { %v143_v3 = vld [vmem:[%s596_s24 + $0x60] sm:$0xff]  ;;  %150 = vst [vmem:[%s605_s25 + $0x40] sm:$0xff] %v142_v2  ;;  %v313_v11 = vld [vmem:[%s596_s24 + $0x88] sm:$0xff]  ;;  %v320_v18 = vld [vmem:[%s596_s24 + $0x90] sm:$0xff]  ;;  %s438_s2 = sshra.s32 %s227_s29, 4  ;;  %s444_s11 = scalar_lea.hbm %s703_s1, 512  ;;  %s439_s2 = int_to_ptr.hbm [resolvable:$true] %s438_s2 }
  0x2d   : > { %v144_v4 = vld [vmem:[%s596_s24 + $0x80] sm:$0xff]  ;;  %151 = vst [vmem:[%s605_s25 + $0x60] sm:$0xff] %v143_v3  ;;  %v314_v12 = vld [vmem:[%s596_s24 + $0xa8] sm:$0xff]  ;;  %v321_v19 = vld [vmem:[%s596_s24 + $0xb0] sm:$0xff]  ;;  %s440_s3 = scalar_lea.hbm %s439_s2, 256  ;;  %p445_p0 = scmp.lt.s32.totalorder %s439_s2, %s703_s1 }
  0x2e   : > { %v145_v5 = vld [vmem:[%s596_s24 + $0xa0] sm:$0xff]  ;;  %152 = vst [vmem:[%s605_s25 + $0x80] sm:$0xff] %v144_v4  ;;  %v315_v13 = vld [vmem:[%s596_s24 + $0xc8] sm:$0xff]  ;;  %v322_v20 = vld [vmem:[%s596_s24 + $0xd0] sm:$0xff]  ;;  %p441_p6 = scmp.ne.s32.totalorder %s439_s2, %s440_s3  ;;  %p446_p1 = scmp.lt.s32.totalorder %s444_s11, %s440_s3 }
  0x2f   : > { %v146_v6 = vld [vmem:[%s596_s24 + $0xc0] sm:$0xff]  ;;  %153 = vst [vmem:[%s605_s25 + $0xa0] sm:$0xff] %v145_v5  ;;  %v316_v14 = vld [vmem:[%s596_s24 + $0xe8] sm:$0xff]  ;;  %v323_v21 = vld [vmem:[%s596_s24 + $0xf0] sm:$0xff] }
  0x30   : > { %v147_v7 = vld [vmem:[%s596_s24 + $0xe0] sm:$0xff]  ;;  %154 = vst [vmem:[%s605_s25 + $0xc0] sm:$0xff] %v146_v6  ;;  %v171_v15 = vld [vmem:[%s596_s24 + $0x8] sm:$0xff]  ;;  %v187_v22 = vld [vmem:[%s596_s24 + $0x10] sm:$0xff]  ;;  %p442_p9 = pnand %p441_p6, %p556_p11  ;;  %p447_p3 = por %p446_p1, %p445_p0 }
  0x31   : > { %155 = vst [vmem:[%s605_s25 + $0xe0] sm:$0xff] %v147_v7  ;;  %v188_v23 = vld [vmem:[%s596_s24 + $0x30] sm:$0xff]  ;;  %v326_v24 = vld [vmem:[%s596_s24 + $0x78] sm:$0xff] }
  0x32   : > { %164 = vst [vmem:[%s605_s25 + $0x8] sm:$0xff] %v310_v8  ;;  %v327_v25 = vld [vmem:[%s596_s24 + $0x98] sm:$0xff]  ;;  %p443_p13 = pneg %p442_p9 }
  0x33   : > { %165 = vst [vmem:[%s605_s25 + $0x28] sm:$0xff] %v311_v9  ;;  %v328_v26 = vld [vmem:[%s596_s24 + $0xb8] sm:$0xff] }
  0x34   : > { %166 = vst [vmem:[%s605_s25 + $0x48] sm:$0xff] %v312_v10  ;;  %v329_v27 = vld [vmem:[%s596_s24 + $0xd8] sm:$0xff]  ;;  %p448_p4 = pnand %p447_p3, %p443_p13 }
  0x35   : > { %167 = vst [vmem:[%s605_s25 + $0x68] sm:$0xff] %v313_v11  ;;  %v330_v28 = vld [vmem:[%s596_s24 + $0xf8] sm:$0xff] }
  0x36   : > { %168 = vst [vmem:[%s605_s25 + $0x88] sm:$0xff] %v314_v12  ;;  %v203_v29 = vld [vmem:[%s596_s24 + $0x18] sm:$0xff] }
  0x37   : > { %169 = vst [vmem:[%s605_s25 + $0xa8] sm:$0xff] %v315_v13  ;;  %v204_v30 = vld [vmem:[%s596_s24 + $0x38] sm:$0xff] }
  0x38   : > { %170 = vst [vmem:[%s605_s25 + $0xc8] sm:$0xff] %v316_v14  ;;  %v205_v31 = vld [vmem:[%s596_s24 + $0x58] sm:$0xff] }
  0x39   : > { %317 = vst [vmem:[%s605_s25 + $0xe8] sm:$0xff] %v171_v15 }
  0x3a   : > { %181 = vst [vmem:[%s605_s25 + $0x10] sm:$0xff] %v318_v16 }
  0x3b   : > { %182 = vst [vmem:[%s605_s25 + $0x30] sm:$0xff] %v319_v17 }
  0x3c   : > { %183 = vst [vmem:[%s605_s25 + $0x50] sm:$0xff] %v320_v18 }
  0x3d   : > { %184 = vst [vmem:[%s605_s25 + $0x70] sm:$0xff] %v321_v19 }
  0x3e   : > { %185 = vst [vmem:[%s605_s25 + $0x90] sm:$0xff] %v322_v20 }
  0x3f   : > { %186 = vst [vmem:[%s605_s25 + $0xb0] sm:$0xff] %v323_v21 }
  0x40   : > { %324 = vst [vmem:[%s605_s25 + $0xd0] sm:$0xff] %v187_v22 }
  0x41   : > { %325 = vst [vmem:[%s605_s25 + $0xf0] sm:$0xff] %v188_v23 }
  0x42   : > { %198 = vst [vmem:[%s605_s25 + $0x18] sm:$0xff] %v326_v24 }
  0x43   : > { %199 = vst [vmem:[%s605_s25 + $0x38] sm:$0xff] %v327_v25 }
  0x44   : > { %200 = vst [vmem:[%s605_s25 + $0x58] sm:$0xff] %v328_v26 }
  0x45   : > { %201 = vst [vmem:[%s605_s25 + $0x78] sm:$0xff] %v329_v27 }
  0x46   : > { %202 = vst [vmem:[%s605_s25 + $0x98] sm:$0xff] %v330_v28 }
  0x47   : > { %331 = vst [vmem:[%s605_s25 + $0xb8] sm:$0xff] %v203_v29 }
  0x48   : > { %332 = vst [vmem:[%s605_s25 + $0xd8] sm:$0xff] %v204_v30 }
  0x49   : > { %333 = vst [vmem:[%s605_s25 + $0xf8] sm:$0xff] %v205_v31 }
  0x4a   : > { %451 = shalt.err (!%p448_p4)
}
  0x4b   : > { %s494_s16 = smov 128   ;;  %s495_s20 = smov 8  }
  0x4c   : > { %346 = dma.vmem_to_hbm [thread:$0]  (%p556_p11), %s225_s10, 4096, %s227_s29, %s211_s30, %s494_s16, %s494_s16, %s495_s20  }
  0x4d PF: > { %s241_s21 = sand.u32 1, %s478_s6   ;;  %p709_p7 = scmp.ge.s32.totalorder %s490_s9, 2 }
  0x4e   : > { %s242_s22 = scalar_lea.sflag [#allocation4], %s241_s21 }
  0x4f   : > { %p353_p5 = pnand %p709_p7, %p560_p12 }
  0x51   : > { %p354_p8 = pneg %p353_p5 }
  0x53   : > { %473 = dma.done.wait (%p354_p8), %s242_s22, 4096  }
  0x54   : > { %475 = vsyncadd (%p354_p8), %s242_s22, 4294963200  ;;  %p14_p10 = scmp.ge.s32.totalorder %s531_s12, 4   ;;  %s710_s6 = smov %s482_s7 }
  0x55   : > { %s711_s7 = smov %s486_s8  ;;  %s712_s8 = smov %s543_s15 }
  0x56   : > { %s713_s9 = smov %s531_s12  ;;  %16 = sbr.rel (!%p14_p10) target bundleno = 5 (0x5), region = 75 }
  0x5b   :  { %248 = vsyncpa [#allocation3], 1 }
  0x5c   :  { %250 = vsyncpa [#allocation3 + $0x1], 1 }
  0x5d   :  { %251 = vsyncpa [#allocation4], 1 }
  0x5e   :  { %253 = vsyncpa [#allocation4 + $0x1], 1 }

</bundles_post_ra>
